<compile_context>
chip_gen: v5e
topology: v5e:2x2
jax: 0.10.0
libtpu: 0.0.40
codegen_flags: <defaults>
</compile_context>

<pallas_src>
import jax
import jax.numpy as jnp
from jax import lax
from jax.experimental import pallas as pl
from jax.experimental.pallas import tpu as pltpu
import numpy as np


def _argmax_first(x, axis, iota_f, bound):
    """First-occurrence argmax along `axis` (f32; VPU compare + XLU reduce)."""
    mx = jnp.max(x, axis=axis, keepdims=True)
    cand = jnp.where(x == mx, iota_f, float(bound))
    return jnp.min(cand, axis=axis, keepdims=True)


def dan_loss_kernel(pred_ref, labels_ref, masks_ref, stats_ref, idx_ref):
    pred = pred_ref[...]        # (Bt, M, M) f32
    labels = labels_ref[...]    # (Bt, M, M) f32
    masks = masks_ref[...]      # (Bt, 2, M) f32 : row 0 = mask0, row 1 = mask1
    _, M, _ = pred.shape
    N = M - 1

    # Tiny iotas: inner region, eye pattern, and argmax index sources.
    row_i = lax.broadcasted_iota(jnp.int32, (1, M, 1), 1)
    col_i = lax.broadcasted_iota(jnp.int32, (1, 1, M), 2)
    row_lt = row_i < N                       # (1, M, 1)
    col_lt = col_i < N                       # (1, 1, M)
    inner = jnp.logical_and(row_lt, col_lt)  # broadcasts to (1, M, M)
    eye = row_i == col_i                     # (1, M, M)

    # Lane-dense masks; derive the row-broadcast (M, 1) forms in-kernel so the
    # wrapper only ships one small lane-major mask array (no narrow DMAs).
    m0_lane = masks[:, 0:1, :]                                       # (Bt, 1, M)
    m1_lane = masks[:, 1:2, :]                                       # (Bt, 1, M)
    m1n_lane = jnp.where(col_lt, m1_lane, 0.0)                       # col N zeroed
    m0_col = jnp.sum(jnp.where(eye, m0_lane, 0.0), axis=2, keepdims=True)  # (Bt, M, 1)
    m0p_col = jnp.where(row_lt, m0_col, 0.0)                         # row N zeroed

    # Masked logits (mask_region_pre / mask_region_next as broadcast vectors).
    x_pre = (m0p_col * pred) * m1_lane
    x_next = (m0_col * pred) * m1n_lane

    # Row softmax (axis=2) in log-softmax form.
    x_pre = x_pre - jnp.max(x_pre, axis=2, keepdims=True)
    e_pre = jnp.exp(x_pre)
    den_pre = jnp.sum(e_pre, axis=2, keepdims=True)                  # (Bt, M, 1)
    pred_pre = e_pre * pl.reciprocal(den_pre, approx=False)
    log_pre = x_pre - jnp.log(den_pre)                               # tiny log only

    # Column softmax (axis=1) in log-softmax form.
    x_next = x_next - jnp.max(x_next, axis=1, keepdims=True)
    e_next = jnp.exp(x_next)
    den_next = jnp.sum(e_next, axis=1, keepdims=True)                # (Bt, 1, M)
    pred_next = e_next * pl.reciprocal(den_next, approx=False)
    log_next = x_next - jnp.log(den_next)

    # log(prediction_all); prediction_all itself is never materialised because
    # argmax(prediction_all) == argmax(log_all) (log is monotone).
    log_all = jnp.where(inner, jnp.maximum(log_pre, log_next), log_pre)

    labels_pre = (m0p_col * labels) * m1_lane
    labels_next = (m0_col * labels) * m1n_lane
    labels_union = labels_next * m0p_col        # == m0p * m1n * labels

    # Per-block (per batch tile) partial reductions; combined in the wrapper
    # (this matches the PyTorch global .item() reductions exactly).
    s_pre = jnp.sum(labels_pre * log_pre)
    s_next = jnp.sum(labels_next * log_next)
    s_all = jnp.sum(labels_pre * log_all)
    s_sim = jnp.sum(labels_union * jnp.abs(pred_next - pred_pre))
    n_lab = jnp.sum(labels)
    n_pre = jnp.sum(labels_pre)
    n_next = jnp.sum(labels_next)
    n_union = jnp.sum(labels_union)

    # Accuracy counters (first-occurrence argmax, matching torch/jnp argmax).
    col_iota_f = col_i.astype(jnp.float32)                           # (1, 1, M)
    row_iota_f = row_i.astype(jnp.float32)                           # (1, M, 1)
    idx_lab_pre = _argmax_first(labels_pre, 2, col_iota_f, M)        # (Bt, M, 1)
    idx_pred_all = _argmax_first(log_all, 2, col_iota_f, M)          # (Bt, M, 1)
    idx_lab_next = _argmax_first(labels_next, 1, row_iota_f, M)      # (Bt, 1, M)
    idx_pred_next = _argmax_first(pred_next, 1, row_iota_f, M)       # (Bt, 1, M)

    match_pre = (idx_pred_all == idx_lab_pre).astype(jnp.float32)
    match_next = (idx_pred_next == idx_lab_next).astype(jnp.float32)

    acc_pre_cnt = jnp.sum(match_pre * m0p_col)     # mask0 restricted to rows < N
    mask_pre_n = jnp.sum(m0p_col)
    acc_next_cnt = jnp.sum(match_next * m1n_lane)  # mask1 restricted to cols < N
    mask_next_n = jnp.sum(m1n_lane)

    # Lane-dense index store: turn the (Bt, M, 1) argmax into a (Bt, 1, M) lane
    # vector via an eye-select + sublane reduce (idx[b, 0, c] = argmax row c).
    # f32-carried indices are exact while M < 2^24 (DAN uses M = max_object+1).
    idx_lane = jnp.sum(jnp.where(eye, idx_pred_all, 0.0), axis=1, keepdims=True)
    idx_ref[...] = idx_lane                                          # unmasked store

    # Lane-dense (128-wide) stats slab, one row per grid step; built from
    # independent one-hot selects + a shallow add tree (no long select chain).
    vals = (s_pre, s_next, s_all, s_sim, n_lab, n_pre, n_next, n_union,
            acc_pre_cnt, mask_pre_n, acc_next_cnt, mask_next_n)
    lane = lax.broadcasted_iota(jnp.int32, (1, 1, 128), 2)
    parts = [jnp.where(lane == k, v, 0.0) for k, v in enumerate(vals)]
    while len(parts) > 1:
        parts = [parts[i] + parts[i + 1] if i + 1 < len(parts) else parts[i]
                 for i in range(0, len(parts), 2)]
    stats_ref[...] = parts[0]


def dan_loss(prediction, labels, mask0, mask1, max_object):
    """Pallas implementation of DANLoss.forward.

    prediction, labels: (B, 1, M, M);  mask0, mask1: (B, 1, M) bool, M = max_object+1.
    """
    B = prediction.shape[0]
    N = max_object
    M = N + 1

    pred = prediction.reshape(B, M, M).astype(jnp.float32)
    lab = labels.reshape(B, M, M).astype(jnp.float32)
    # One packed, lane-major mask array: row 0 = mask0, row 1 = mask1.
    m_packed = jnp.concatenate(
        [mask0.reshape(B, 1, M), mask1.reshape(B, 1, M)], axis=1
    ).astype(jnp.float32)                                            # (B, 2, M)

    # Batch tiling: >= 2 grid steps when B >= 2 so v7x megacore keeps both
    # TensorCores busy, and at most BT_MAX elements per block so vreg live
    # ranges stay bounded.  VMEM is never the constraint here (few 100 KB).
    BT_MAX = 8
    num_steps = max(2 if B >= 2 else 1, -(-B // BT_MAX))
    Bt = -(-B // num_steps)
    B_pad = num_steps * Bt
    if B_pad != B:
        padw = ((0, B_pad - B), (0, 0), (0, 0))
        pred = jnp.pad(pred, padw)
        lab = jnp.pad(lab, padw)
        m_packed = jnp.pad(m_packed, padw)   # zero masks -> zero stats contribution

    stats, idx_f = pl.pallas_call(
        dan_loss_kernel,
        grid=(num_steps,),
        out_shape=(jax.ShapeDtypeStruct((num_steps, 1, 128), jnp.float32),
                   jax.ShapeDtypeStruct((B_pad, 1, M), jnp.float32)),
        in_specs=[pl.BlockSpec((Bt, M, M), lambda b: (b, 0, 0)),
                  pl.BlockSpec((Bt, M, M), lambda b: (b, 0, 0)),
                  pl.BlockSpec((Bt, 2, M), lambda b: (b, 0, 0))],
        out_specs=(pl.BlockSpec((1, 1, 128), lambda b: (b, 0, 0)),
                   pl.BlockSpec((Bt, 1, M), lambda b: (b, 0, 0))),
        compiler_params=pltpu.CompilerParams(
            dimension_semantics=("parallel",)),
    )(pred, lab, m_packed)

    totals = jnp.sum(stats[:, 0, :12], axis=0)          # combine per-step partials
    sum_pre, sum_next, sum_all, sum_sim = totals[0], totals[1], totals[2], totals[3]
    labels_num, num_pre, num_next, num_union = totals[4], totals[5], totals[6], totals[7]
    acc_pre_cnt, mask_pre_num = totals[8], totals[9]
    acc_next_cnt, mask_next_num = totals[10], totals[11]

    # Conditional normalisations (PyTorch does this with .item() Python branches).
    loss_pre = -sum_pre / jnp.where(num_pre != 0, num_pre, 1.0)
    loss_next = -sum_next / jnp.where(num_next != 0, num_next, 1.0)
    loss_a = -sum_all / jnp.where((num_pre != 0) & (num_next != 0), num_pre, 1.0)
    loss_sim = jnp.where(num_union != 0,
                         sum_sim / jnp.where(labels_num != 0, labels_num, 1.0),
                         sum_sim)
    accuracy_pre = jnp.where(mask_pre_num > 0,
                             acc_pre_cnt / jnp.where(mask_pre_num > 0, mask_pre_num, 1.0),
                             acc_pre_cnt + 1.0)
    accuracy_next = jnp.where(mask_next_num > 0,
                              acc_next_cnt / jnp.where(mask_next_num > 0, mask_next_num, 1.0),
                              acc_next_cnt + 1.0)
    loss = (loss_pre + loss_next + loss_a + loss_sim) / 4.0
    mean_acc = (accuracy_pre + accuracy_next) / 2.0
    indexes_pre = idx_f[:B, :, :max_object].astype(jnp.int32)        # (B, 1, N)
    return (loss_pre, loss_next, loss_sim, loss,
            accuracy_pre, accuracy_next, mean_acc, indexes_pre)


def dan_loss_ref(prediction, labels, mask0, mask1, max_object):
    """Pure-JAX mirror of the PyTorch forward (for validation)."""
    N = max_object
    m0 = mask0.astype(jnp.float32)[:, :, :, None]
    m1 = mask1.astype(jnp.float32)[:, :, None, :]
    mask_region = m0 * m1
    mask_region_pre = mask_region.at[:, :, N, :].set(0.0)
    mask_region_next = mask_region.at[:, :, :, N].set(0.0)
    mask_region_union = mask_region_pre * mask_region_next
    pred_pre = jax.nn.softmax(mask_region_pre * prediction, axis=3)
    pred_next = jax.nn.softmax(mask_region_next * prediction, axis=2)
    pred_all = pred_pre.at[:, :, :N, :N].set(
        jnp.maximum(pred_pre, pred_next)[:, :, :N, :N])
    labels_f = labels.astype(jnp.float32)
    labels_pre = mask_region_pre * labels_f
    labels_next = mask_region_next * labels_f
    labels_union = mask_region_union * labels_f
    labels_num = labels_f.sum()
    num_pre = labels_pre.sum()
    num_next = labels_next.sum()
    num_union = labels_union.sum()
    loss_pre = -(labels_pre * jnp.log(pred_pre)).sum() / jnp.where(num_pre != 0, num_pre, 1.0)
    loss_next = -(labels_next * jnp.log(pred_next)).sum() / jnp.where(num_next != 0, num_next, 1.0)
    loss_a = -(labels_pre * jnp.log(pred_all)).sum() / jnp.where(
        (num_pre != 0) & (num_next != 0), num_pre, 1.0)
    sim = (labels_union * jnp.abs(1 - pred_pre - (1 - pred_next))).sum()
    loss_sim = jnp.where(num_union != 0,
                         sim / jnp.where(labels_num != 0, labels_num, 1.0), sim)
    idx_lab = jnp.argmax(labels_pre, axis=3)[:, :, :-1]
    idx_pre = jnp.argmax(pred_all, axis=3)[:, :, :-1]
    mp = mask0[:, :, :-1]
    mpn = mp.sum()
    cnt_p = ((idx_pre == idx_lab) & mp).sum()
    acc_pre = jnp.where(mpn > 0, cnt_p / jnp.where(mpn > 0, mpn, 1), cnt_p + 1.0)
    idx_lab_n = jnp.argmax(labels_next, axis=2)[:, :, :-1]
    idx_next = jnp.argmax(pred_next, axis=2)[:, :, :-1]
    mn = mask1[:, :, :-1]
    mnn = mn.sum()
    cnt_n = ((idx_next == idx_lab_n) & mn).sum()
    acc_next = jnp.where(mnn > 0, cnt_n / jnp.where(mnn > 0, mnn, 1), cnt_n + 1.0)
    loss = (loss_pre + loss_next + loss_a + loss_sim) / 4.0
    return (loss_pre, loss_next, loss_sim, loss, acc_pre, acc_next,
            (acc_pre + acc_next) / 2.0, idx_pre.astype(jnp.int32))


if __name__ == "__main__":
    # DANLoss has no learnable parameters; cfg = {'device': ..., 'max_object': N}.
    B, N = 2, 8
    M = N + 1
    key = jax.random.PRNGKey(0)
    k1, k2 = jax.random.split(key)
    prediction = jax.random.normal(k1, (B, 1, M, M), dtype=jnp.float32)
    labels = (jax.random.uniform(k2, (B, 1, M, M)) < 0.25).astype(jnp.float32)

    def make_mask(n_valid):
        m = jnp.zeros((M,), dtype=bool)
        m = m.at[:n_valid].set(True).at[M - 1].set(True)
        return m

    mask0 = jnp.stack([make_mask(5), make_mask(7)])[:, None, :]   # (B, 1, M) bool
    mask1 = jnp.stack([make_mask(6), make_mask(4)])[:, None, :]   # (B, 1, M) bool

    outs = dan_loss(prediction, labels, mask0, mask1, N)
    outs = jax.block_until_ready(outs)

    refs = dan_loss_ref(prediction, labels, mask0, mask1, N)
    for o, r in zip(outs[:7], refs[:7]):
        np.testing.assert_allclose(np.asarray(o), np.asarray(r), rtol=1e-4, atol=1e-5)
    np.testing.assert_array_equal(np.asarray(outs[7]), np.asarray(refs[7]))

    print("KERNEL_OK")
</pallas_src>

<mosaic_0001>
module attributes {stable_mosaic.version = 11 : i64} {
  func.func @dan_loss_kernel(%arg0: i32, %arg1: memref<1x9x9xf32, #tpu.memory_space<vmem>>, %arg2: memref<1x9x9xf32, #tpu.memory_space<vmem>>, %arg3: memref<1x2x9xf32, #tpu.memory_space<vmem>>, %arg4: memref<1x1x128xf32, #tpu.memory_space<vmem>>, %arg5: memref<1x1x9xf32, #tpu.memory_space<vmem>>) attributes {dimension_semantics = [#tpu.dimension_semantics<parallel>], iteration_bounds = array<i64: 2>, scalar_prefetch = 0 : i64, scratch_operands = 0 : i64, tpu.core_type = #tpu.core_type<tc>, window_params = [{transform_indices = @transform_0, window_bounds = array<i64: 1, 9, 9>}, {transform_indices = @transform_1, window_bounds = array<i64: 1, 9, 9>}, {transform_indices = @transform_2, window_bounds = array<i64: 1, 2, 9>}, {transform_indices = @transform_3, window_bounds = array<i64: 1, 1, 128>}, {transform_indices = @transform_4, window_bounds = array<i64: 1, 1, 9>}]} {
    %c0 = arith.constant 0 : index
    %c0_0 = arith.constant 0 : index
    %c0_1 = arith.constant 0 : index
    %0 = vector.load %arg1[%c0, %c0_0, %c0_1] : memref<1x9x9xf32, #tpu.memory_space<vmem>>, vector<1x9x9xf32>
    %c0_2 = arith.constant 0 : index
    %c0_3 = arith.constant 0 : index
    %c0_4 = arith.constant 0 : index
    %1 = vector.load %arg2[%c0_2, %c0_3, %c0_4] : memref<1x9x9xf32, #tpu.memory_space<vmem>>, vector<1x9x9xf32>
    %c0_5 = arith.constant 0 : index
    %c0_6 = arith.constant 0 : index
    %c0_7 = arith.constant 0 : index
    %2 = vector.load %arg3[%c0_5, %c0_6, %c0_7] : memref<1x2x9xf32, #tpu.memory_space<vmem>>, vector<1x2x9xf32>
    %3 = tpu.iota {dimensions = array<i32: 1>} : vector<1x9x1xi32>
    %4 = tpu.iota {dimensions = array<i32: 2>} : vector<1x1x9xi32>
    %c8_i32 = arith.constant 8 : i32
    %5 = vector.broadcast %c8_i32 : i32 to vector<1x9x1xi32>
    %6 = arith.cmpi slt, %3, %5 : vector<1x9x1xi32>
    %c8_i32_8 = arith.constant 8 : i32
    %7 = vector.broadcast %c8_i32_8 : i32 to vector<1x1x9xi32>
    %8 = arith.cmpi slt, %4, %7 : vector<1x1x9xi32>
    %9 = vector.broadcast %6 : vector<1x9x1xi1> to vector<1x9x9xi1>
    %10 = vector.broadcast %8 : vector<1x1x9xi1> to vector<1x9x9xi1>
    %11 = arith.andi %9, %10 : vector<1x9x9xi1>
    %12 = vector.broadcast %3 : vector<1x9x1xi32> to vector<1x9x9xi32>
    %13 = vector.broadcast %4 : vector<1x1x9xi32> to vector<1x9x9xi32>
    %14 = arith.cmpi eq, %12, %13 : vector<1x9x9xi32>
    %15 = vector.extract_strided_slice %2 {offsets = [0, 0, 0], sizes = [1, 1, 9], strides = [1, 1, 1]} : vector<1x2x9xf32> to vector<1x1x9xf32>
    %16 = vector.extract_strided_slice %2 {offsets = [0, 1, 0], sizes = [1, 1, 9], strides = [1, 1, 1]} : vector<1x2x9xf32> to vector<1x1x9xf32>
    %cst = arith.constant 0.000000e+00 : f32
    %17 = vector.broadcast %cst : f32 to vector<1x1x9xf32>
    %18 = arith.select %8, %16, %17 : vector<1x1x9xi1>, vector<1x1x9xf32>
    %cst_9 = arith.constant 0.000000e+00 : f32
    %19 = vector.shape_cast %15 : vector<1x1x9xf32> to vector<1x1x9xf32>
    %20 = vector.broadcast %19 : vector<1x1x9xf32> to vector<1x9x9xf32>
    %21 = vector.broadcast %cst_9 : f32 to vector<1x9x9xf32>
    %22 = arith.select %14, %20, %21 : vector<1x9x9xi1>, vector<1x9x9xf32>
    %cst_10 = arith.constant dense<0.000000e+00> : vector<1x9xf32>
    %23 = vector.multi_reduction <add>, %22, %cst_10 [2] : vector<1x9x9xf32> to vector<1x9xf32>
    %24 = vector.shape_cast %23 : vector<1x9xf32> to vector<1x9x1xf32>
    %cst_11 = arith.constant 0.000000e+00 : f32
    %25 = vector.broadcast %cst_11 : f32 to vector<1x9x1xf32>
    %26 = arith.select %6, %24, %25 : vector<1x9x1xi1>, vector<1x9x1xf32>
    %27 = vector.broadcast %26 : vector<1x9x1xf32> to vector<1x9x9xf32>
    %28 = arith.mulf %27, %0 : vector<1x9x9xf32>
    %29 = vector.broadcast %16 : vector<1x1x9xf32> to vector<1x9x9xf32>
    %30 = arith.mulf %28, %29 : vector<1x9x9xf32>
    %31 = vector.broadcast %24 : vector<1x9x1xf32> to vector<1x9x9xf32>
    %32 = arith.mulf %31, %0 : vector<1x9x9xf32>
    %33 = vector.broadcast %18 : vector<1x1x9xf32> to vector<1x9x9xf32>
    %34 = arith.mulf %32, %33 : vector<1x9x9xf32>
    %cst_12 = arith.constant dense<0xFF800000> : vector<1x9xf32>
    %35 = vector.multi_reduction <maximumf>, %30, %cst_12 [2] : vector<1x9x9xf32> to vector<1x9xf32>
    %36 = vector.shape_cast %35 : vector<1x9xf32> to vector<1x9x1xf32>
    %37 = vector.broadcast %36 : vector<1x9x1xf32> to vector<1x9x9xf32>
    %38 = arith.subf %30, %37 : vector<1x9x9xf32>
    %39 = math.exp %38 : vector<1x9x9xf32>
    %cst_13 = arith.constant dense<0.000000e+00> : vector<1x9xf32>
    %40 = vector.multi_reduction <add>, %39, %cst_13 [2] : vector<1x9x9xf32> to vector<1x9xf32>
    %41 = vector.shape_cast %40 : vector<1x9xf32> to vector<1x9x1xf32>
    %42 = tpu.reciprocal %41 : vector<1x9x1xf32> -> vector<1x9x1xf32>
    %43 = vector.broadcast %42 : vector<1x9x1xf32> to vector<1x9x9xf32>
    %44 = arith.mulf %39, %43 : vector<1x9x9xf32>
    %45 = math.log %41 : vector<1x9x1xf32>
    %46 = vector.broadcast %45 : vector<1x9x1xf32> to vector<1x9x9xf32>
    %47 = arith.subf %38, %46 : vector<1x9x9xf32>
    %cst_14 = arith.constant dense<0xFF800000> : vector<1x9xf32>
    %48 = vector.multi_reduction <maximumf>, %34, %cst_14 [1] : vector<1x9x9xf32> to vector<1x9xf32>
    %49 = vector.shape_cast %48 : vector<1x9xf32> to vector<1x1x9xf32>
    %50 = vector.broadcast %49 : vector<1x1x9xf32> to vector<1x9x9xf32>
    %51 = arith.subf %34, %50 : vector<1x9x9xf32>
    %52 = math.exp %51 : vector<1x9x9xf32>
    %cst_15 = arith.constant dense<0.000000e+00> : vector<1x9xf32>
    %53 = vector.multi_reduction <add>, %52, %cst_15 [1] : vector<1x9x9xf32> to vector<1x9xf32>
    %54 = vector.shape_cast %53 : vector<1x9xf32> to vector<1x1x9xf32>
    %55 = tpu.reciprocal %54 : vector<1x1x9xf32> -> vector<1x1x9xf32>
    %56 = vector.broadcast %55 : vector<1x1x9xf32> to vector<1x9x9xf32>
    %57 = arith.mulf %52, %56 : vector<1x9x9xf32>
    %58 = math.log %54 : vector<1x1x9xf32>
    %59 = vector.broadcast %58 : vector<1x1x9xf32> to vector<1x9x9xf32>
    %60 = arith.subf %51, %59 : vector<1x9x9xf32>
    %61 = arith.maximumf %47, %60 : vector<1x9x9xf32>
    %62 = arith.select %11, %61, %47 : vector<1x9x9xi1>, vector<1x9x9xf32>
    %63 = vector.broadcast %26 : vector<1x9x1xf32> to vector<1x9x9xf32>
    %64 = arith.mulf %63, %1 : vector<1x9x9xf32>
    %65 = vector.broadcast %16 : vector<1x1x9xf32> to vector<1x9x9xf32>
    %66 = arith.mulf %64, %65 : vector<1x9x9xf32>
    %67 = vector.broadcast %24 : vector<1x9x1xf32> to vector<1x9x9xf32>
    %68 = arith.mulf %67, %1 : vector<1x9x9xf32>
    %69 = vector.broadcast %18 : vector<1x1x9xf32> to vector<1x9x9xf32>
    %70 = arith.mulf %68, %69 : vector<1x9x9xf32>
    %71 = vector.broadcast %26 : vector<1x9x1xf32> to vector<1x9x9xf32>
    %72 = arith.mulf %70, %71 : vector<1x9x9xf32>
    %73 = arith.mulf %66, %47 : vector<1x9x9xf32>
    %74 = vector.shape_cast %73 : vector<1x9x9xf32> to vector<1x1x9x9xf32>
    %cst_16 = arith.constant dense<0.000000e+00> : vector<1xf32>
    %75 = vector.multi_reduction <add>, %74, %cst_16 [1, 2, 3] : vector<1x1x9x9xf32> to vector<1xf32>
    %76 = vector.shape_cast %75 : vector<1xf32> to vector<1x1x1x1xf32>
    %77 = vector.extract %76[0, 0, 0, 0] : f32 from vector<1x1x1x1xf32>
    %78 = arith.mulf %70, %60 : vector<1x9x9xf32>
    %79 = vector.shape_cast %78 : vector<1x9x9xf32> to vector<1x1x9x9xf32>
    %cst_17 = arith.constant dense<0.000000e+00> : vector<1xf32>
    %80 = vector.multi_reduction <add>, %79, %cst_17 [1, 2, 3] : vector<1x1x9x9xf32> to vector<1xf32>
    %81 = vector.shape_cast %80 : vector<1xf32> to vector<1x1x1x1xf32>
    %82 = vector.extract %81[0, 0, 0, 0] : f32 from vector<1x1x1x1xf32>
    %83 = arith.mulf %66, %62 : vector<1x9x9xf32>
    %84 = vector.shape_cast %83 : vector<1x9x9xf32> to vector<1x1x9x9xf32>
    %cst_18 = arith.constant dense<0.000000e+00> : vector<1xf32>
    %85 = vector.multi_reduction <add>, %84, %cst_18 [1, 2, 3] : vector<1x1x9x9xf32> to vector<1xf32>
    %86 = vector.shape_cast %85 : vector<1xf32> to vector<1x1x1x1xf32>
    %87 = vector.extract %86[0, 0, 0, 0] : f32 from vector<1x1x1x1xf32>
    %88 = arith.subf %57, %44 : vector<1x9x9xf32>
    %89 = math.absf %88 : vector<1x9x9xf32>
    %90 = arith.mulf %72, %89 : vector<1x9x9xf32>
    %91 = vector.shape_cast %90 : vector<1x9x9xf32> to vector<1x1x9x9xf32>
    %cst_19 = arith.constant dense<0.000000e+00> : vector<1xf32>
    %92 = vector.multi_reduction <add>, %91, %cst_19 [1, 2, 3] : vector<1x1x9x9xf32> to vector<1xf32>
    %93 = vector.shape_cast %92 : vector<1xf32> to vector<1x1x1x1xf32>
    %94 = vector.extract %93[0, 0, 0, 0] : f32 from vector<1x1x1x1xf32>
    %95 = vector.shape_cast %1 : vector<1x9x9xf32> to vector<1x1x9x9xf32>
    %cst_20 = arith.constant dense<0.000000e+00> : vector<1xf32>
    %96 = vector.multi_reduction <add>, %95, %cst_20 [1, 2, 3] : vector<1x1x9x9xf32> to vector<1xf32>
    %97 = vector.shape_cast %96 : vector<1xf32> to vector<1x1x1x1xf32>
    %98 = vector.extract %97[0, 0, 0, 0] : f32 from vector<1x1x1x1xf32>
    %99 = vector.shape_cast %66 : vector<1x9x9xf32> to vector<1x1x9x9xf32>
    %cst_21 = arith.constant dense<0.000000e+00> : vector<1xf32>
    %100 = vector.multi_reduction <add>, %99, %cst_21 [1, 2, 3] : vector<1x1x9x9xf32> to vector<1xf32>
    %101 = vector.shape_cast %100 : vector<1xf32> to vector<1x1x1x1xf32>
    %102 = vector.extract %101[0, 0, 0, 0] : f32 from vector<1x1x1x1xf32>
    %103 = vector.shape_cast %70 : vector<1x9x9xf32> to vector<1x1x9x9xf32>
    %cst_22 = arith.constant dense<0.000000e+00> : vector<1xf32>
    %104 = vector.multi_reduction <add>, %103, %cst_22 [1, 2, 3] : vector<1x1x9x9xf32> to vector<1xf32>
    %105 = vector.shape_cast %104 : vector<1xf32> to vector<1x1x1x1xf32>
    %106 = vector.extract %105[0, 0, 0, 0] : f32 from vector<1x1x1x1xf32>
    %107 = vector.shape_cast %72 : vector<1x9x9xf32> to vector<1x1x9x9xf32>
    %cst_23 = arith.constant dense<0.000000e+00> : vector<1xf32>
    %108 = vector.multi_reduction <add>, %107, %cst_23 [1, 2, 3] : vector<1x1x9x9xf32> to vector<1xf32>
    %109 = vector.shape_cast %108 : vector<1xf32> to vector<1x1x1x1xf32>
    %110 = vector.extract %109[0, 0, 0, 0] : f32 from vector<1x1x1x1xf32>
    %111 = arith.sitofp %4 : vector<1x1x9xi32> to vector<1x1x9xf32>
    %112 = arith.sitofp %3 : vector<1x9x1xi32> to vector<1x9x1xf32>
    %cst_24 = arith.constant dense<0xFF800000> : vector<1x9xf32>
    %113 = vector.multi_reduction <maximumf>, %66, %cst_24 [2] : vector<1x9x9xf32> to vector<1x9xf32>
    %114 = vector.shape_cast %113 : vector<1x9xf32> to vector<1x9x1xf32>
    %115 = vector.broadcast %114 : vector<1x9x1xf32> to vector<1x9x9xf32>
    %116 = arith.cmpf oeq, %66, %115 : vector<1x9x9xf32>
    %cst_25 = arith.constant 9.000000e+00 : f32
    %117 = vector.shape_cast %111 : vector<1x1x9xf32> to vector<1x1x9xf32>
    %118 = vector.broadcast %117 : vector<1x1x9xf32> to vector<1x9x9xf32>
    %119 = vector.broadcast %cst_25 : f32 to vector<1x9x9xf32>
    %120 = arith.select %116, %118, %119 : vector<1x9x9xi1>, vector<1x9x9xf32>
    %cst_26 = arith.constant dense<0x7F800000> : vector<1x9xf32>
    %121 = vector.multi_reduction <minimumf>, %120, %cst_26 [2] : vector<1x9x9xf32> to vector<1x9xf32>
    %122 = vector.shape_cast %121 : vector<1x9xf32> to vector<1x9x1xf32>
    %cst_27 = arith.constant dense<0xFF800000> : vector<1x9xf32>
    %123 = vector.multi_reduction <maximumf>, %62, %cst_27 [2] : vector<1x9x9xf32> to vector<1x9xf32>
    %124 = vector.shape_cast %123 : vector<1x9xf32> to vector<1x9x1xf32>
    %125 = vector.broadcast %124 : vector<1x9x1xf32> to vector<1x9x9xf32>
    %126 = arith.cmpf oeq, %62, %125 : vector<1x9x9xf32>
    %cst_28 = arith.constant 9.000000e+00 : f32
    %127 = vector.shape_cast %111 : vector<1x1x9xf32> to vector<1x1x9xf32>
    %128 = vector.broadcast %127 : vector<1x1x9xf32> to vector<1x9x9xf32>
    %129 = vector.broadcast %cst_28 : f32 to vector<1x9x9xf32>
    %130 = arith.select %126, %128, %129 : vector<1x9x9xi1>, vector<1x9x9xf32>
    %cst_29 = arith.constant dense<0x7F800000> : vector<1x9xf32>
    %131 = vector.multi_reduction <minimumf>, %130, %cst_29 [2] : vector<1x9x9xf32> to vector<1x9xf32>
    %132 = vector.shape_cast %131 : vector<1x9xf32> to vector<1x9x1xf32>
    %cst_30 = arith.constant dense<0xFF800000> : vector<1x9xf32>
    %133 = vector.multi_reduction <maximumf>, %70, %cst_30 [1] : vector<1x9x9xf32> to vector<1x9xf32>
    %134 = vector.shape_cast %133 : vector<1x9xf32> to vector<1x1x9xf32>
    %135 = vector.broadcast %134 : vector<1x1x9xf32> to vector<1x9x9xf32>
    %136 = arith.cmpf oeq, %70, %135 : vector<1x9x9xf32>
    %cst_31 = arith.constant 9.000000e+00 : f32
    %137 = vector.shape_cast %112 : vector<1x9x1xf32> to vector<1x9x1xf32>
    %138 = vector.broadcast %137 : vector<1x9x1xf32> to vector<1x9x9xf32>
    %139 = vector.broadcast %cst_31 : f32 to vector<1x9x9xf32>
    %140 = arith.select %136, %138, %139 : vector<1x9x9xi1>, vector<1x9x9xf32>
    %cst_32 = arith.constant dense<0x7F800000> : vector<1x9xf32>
    %141 = vector.multi_reduction <minimumf>, %140, %cst_32 [1] : vector<1x9x9xf32> to vector<1x9xf32>
    %142 = vector.shape_cast %141 : vector<1x9xf32> to vector<1x1x9xf32>
    %cst_33 = arith.constant dense<0xFF800000> : vector<1x9xf32>
    %143 = vector.multi_reduction <maximumf>, %57, %cst_33 [1] : vector<1x9x9xf32> to vector<1x9xf32>
    %144 = vector.shape_cast %143 : vector<1x9xf32> to vector<1x1x9xf32>
    %145 = vector.broadcast %144 : vector<1x1x9xf32> to vector<1x9x9xf32>
    %146 = arith.cmpf oeq, %57, %145 : vector<1x9x9xf32>
    %cst_34 = arith.constant 9.000000e+00 : f32
    %147 = vector.shape_cast %112 : vector<1x9x1xf32> to vector<1x9x1xf32>
    %148 = vector.broadcast %147 : vector<1x9x1xf32> to vector<1x9x9xf32>
    %149 = vector.broadcast %cst_34 : f32 to vector<1x9x9xf32>
    %150 = arith.select %146, %148, %149 : vector<1x9x9xi1>, vector<1x9x9xf32>
    %cst_35 = arith.constant dense<0x7F800000> : vector<1x9xf32>
    %151 = vector.multi_reduction <minimumf>, %150, %cst_35 [1] : vector<1x9x9xf32> to vector<1x9xf32>
    %152 = vector.shape_cast %151 : vector<1x9xf32> to vector<1x1x9xf32>
    %153 = arith.cmpf oeq, %132, %122 : vector<1x9x1xf32>
    %154 = arith.extui %153 : vector<1x9x1xi1> to vector<1x9x1xi32>
    %155 = arith.sitofp %154 : vector<1x9x1xi32> to vector<1x9x1xf32>
    %156 = arith.cmpf oeq, %152, %142 : vector<1x1x9xf32>
    %157 = arith.extui %156 : vector<1x1x9xi1> to vector<1x1x9xi32>
    %158 = arith.sitofp %157 : vector<1x1x9xi32> to vector<1x1x9xf32>
    %159 = arith.mulf %155, %26 : vector<1x9x1xf32>
    %160 = vector.shape_cast %159 : vector<1x9x1xf32> to vector<1x1x9x1xf32>
    %cst_36 = arith.constant dense<0.000000e+00> : vector<1xf32>
    %161 = vector.multi_reduction <add>, %160, %cst_36 [1, 2, 3] : vector<1x1x9x1xf32> to vector<1xf32>
    %162 = vector.shape_cast %161 : vector<1xf32> to vector<1x1x1x1xf32>
    %163 = vector.extract %162[0, 0, 0, 0] : f32 from vector<1x1x1x1xf32>
    %164 = vector.shape_cast %26 : vector<1x9x1xf32> to vector<1x1x9x1xf32>
    %cst_37 = arith.constant dense<0.000000e+00> : vector<1xf32>
    %165 = vector.multi_reduction <add>, %164, %cst_37 [1, 2, 3] : vector<1x1x9x1xf32> to vector<1xf32>
    %166 = vector.shape_cast %165 : vector<1xf32> to vector<1x1x1x1xf32>
    %167 = vector.extract %166[0, 0, 0, 0] : f32 from vector<1x1x1x1xf32>
    %168 = arith.mulf %158, %18 : vector<1x1x9xf32>
    %169 = vector.shape_cast %168 : vector<1x1x9xf32> to vector<1x1x1x9xf32>
    %cst_38 = arith.constant dense<0.000000e+00> : vector<1xf32>
    %170 = vector.multi_reduction <add>, %169, %cst_38 [1, 2, 3] : vector<1x1x1x9xf32> to vector<1xf32>
    %171 = vector.shape_cast %170 : vector<1xf32> to vector<1x1x1x1xf32>
    %172 = vector.extract %171[0, 0, 0, 0] : f32 from vector<1x1x1x1xf32>
    %173 = vector.shape_cast %18 : vector<1x1x9xf32> to vector<1x1x1x9xf32>
    %cst_39 = arith.constant dense<0.000000e+00> : vector<1xf32>
    %174 = vector.multi_reduction <add>, %173, %cst_39 [1, 2, 3] : vector<1x1x1x9xf32> to vector<1xf32>
    %175 = vector.shape_cast %174 : vector<1xf32> to vector<1x1x1x1xf32>
    %176 = vector.extract %175[0, 0, 0, 0] : f32 from vector<1x1x1x1xf32>
    %cst_40 = arith.constant 0.000000e+00 : f32
    %177 = vector.shape_cast %132 : vector<1x9x1xf32> to vector<1x9x1xf32>
    %178 = vector.broadcast %177 : vector<1x9x1xf32> to vector<1x9x9xf32>
    %179 = vector.broadcast %cst_40 : f32 to vector<1x9x9xf32>
    %180 = arith.select %14, %178, %179 : vector<1x9x9xi1>, vector<1x9x9xf32>
    %cst_41 = arith.constant dense<0.000000e+00> : vector<1x9xf32>
    %181 = vector.multi_reduction <add>, %180, %cst_41 [1] : vector<1x9x9xf32> to vector<1x9xf32>
    %182 = vector.shape_cast %181 : vector<1x9xf32> to vector<1x1x9xf32>
    %c0_42 = arith.constant 0 : index
    %c0_43 = arith.constant 0 : index
    %c0_44 = arith.constant 0 : index
    %183 = vector.load %arg5[%c0_42, %c0_43, %c0_44] : memref<1x1x9xf32, #tpu.memory_space<vmem>>, vector<1x1x9xf32>
    tpu.vector_store %arg5[%c0_42, %c0_43, %c0_44], %182 {strides = array<i32>} : memref<1x1x9xf32, #tpu.memory_space<vmem>>, vector<1x1x9xf32>,
    %184 = tpu.iota {dimensions = array<i32: 2>} : vector<1x1x128xi32>
    %c0_i32 = arith.constant 0 : i32
    %185 = vector.broadcast %c0_i32 : i32 to vector<1x1x128xi32>
    %186 = arith.cmpi eq, %184, %185 : vector<1x1x128xi32>
    %cst_45 = arith.constant 0.000000e+00 : f32
    %187 = vector.broadcast %77 : f32 to vector<1x1x128xf32>
    %188 = vector.broadcast %cst_45 : f32 to vector<1x1x128xf32>
    %189 = arith.select %186, %187, %188 : vector<1x1x128xi1>, vector<1x1x128xf32>
    %c1_i32 = arith.constant 1 : i32
    %190 = vector.broadcast %c1_i32 : i32 to vector<1x1x128xi32>
    %191 = arith.cmpi eq, %184, %190 : vector<1x1x128xi32>
    %cst_46 = arith.constant 0.000000e+00 : f32
    %192 = vector.broadcast %82 : f32 to vector<1x1x128xf32>
    %193 = vector.broadcast %cst_46 : f32 to vector<1x1x128xf32>
    %194 = arith.select %191, %192, %193 : vector<1x1x128xi1>, vector<1x1x128xf32>
    %c2_i32 = arith.constant 2 : i32
    %195 = vector.broadcast %c2_i32 : i32 to vector<1x1x128xi32>
    %196 = arith.cmpi eq, %184, %195 : vector<1x1x128xi32>
    %cst_47 = arith.constant 0.000000e+00 : f32
    %197 = vector.broadcast %87 : f32 to vector<1x1x128xf32>
    %198 = vector.broadcast %cst_47 : f32 to vector<1x1x128xf32>
    %199 = arith.select %196, %197, %198 : vector<1x1x128xi1>, vector<1x1x128xf32>
    %c3_i32 = arith.constant 3 : i32
    %200 = vector.broadcast %c3_i32 : i32 to vector<1x1x128xi32>
    %201 = arith.cmpi eq, %184, %200 : vector<1x1x128xi32>
    %cst_48 = arith.constant 0.000000e+00 : f32
    %202 = vector.broadcast %94 : f32 to vector<1x1x128xf32>
    %203 = vector.broadcast %cst_48 : f32 to vector<1x1x128xf32>
    %204 = arith.select %201, %202, %203 : vector<1x1x128xi1>, vector<1x1x128xf32>
    %c4_i32 = arith.constant 4 : i32
    %205 = vector.broadcast %c4_i32 : i32 to vector<1x1x128xi32>
    %206 = arith.cmpi eq, %184, %205 : vector<1x1x128xi32>
    %cst_49 = arith.constant 0.000000e+00 : f32
    %207 = vector.broadcast %98 : f32 to vector<1x1x128xf32>
    %208 = vector.broadcast %cst_49 : f32 to vector<1x1x128xf32>
    %209 = arith.select %206, %207, %208 : vector<1x1x128xi1>, vector<1x1x128xf32>
    %c5_i32 = arith.constant 5 : i32
    %210 = vector.broadcast %c5_i32 : i32 to vector<1x1x128xi32>
    %211 = arith.cmpi eq, %184, %210 : vector<1x1x128xi32>
    %cst_50 = arith.constant 0.000000e+00 : f32
    %212 = vector.broadcast %102 : f32 to vector<1x1x128xf32>
    %213 = vector.broadcast %cst_50 : f32 to vector<1x1x128xf32>
    %214 = arith.select %211, %212, %213 : vector<1x1x128xi1>, vector<1x1x128xf32>
    %c6_i32 = arith.constant 6 : i32
    %215 = vector.broadcast %c6_i32 : i32 to vector<1x1x128xi32>
    %216 = arith.cmpi eq, %184, %215 : vector<1x1x128xi32>
    %cst_51 = arith.constant 0.000000e+00 : f32
    %217 = vector.broadcast %106 : f32 to vector<1x1x128xf32>
    %218 = vector.broadcast %cst_51 : f32 to vector<1x1x128xf32>
    %219 = arith.select %216, %217, %218 : vector<1x1x128xi1>, vector<1x1x128xf32>
    %c7_i32 = arith.constant 7 : i32
    %220 = vector.broadcast %c7_i32 : i32 to vector<1x1x128xi32>
    %221 = arith.cmpi eq, %184, %220 : vector<1x1x128xi32>
    %cst_52 = arith.constant 0.000000e+00 : f32
    %222 = vector.broadcast %110 : f32 to vector<1x1x128xf32>
    %223 = vector.broadcast %cst_52 : f32 to vector<1x1x128xf32>
    %224 = arith.select %221, %222, %223 : vector<1x1x128xi1>, vector<1x1x128xf32>
    %c8_i32_53 = arith.constant 8 : i32
    %225 = vector.broadcast %c8_i32_53 : i32 to vector<1x1x128xi32>
    %226 = arith.cmpi eq, %184, %225 : vector<1x1x128xi32>
    %cst_54 = arith.constant 0.000000e+00 : f32
    %227 = vector.broadcast %163 : f32 to vector<1x1x128xf32>
    %228 = vector.broadcast %cst_54 : f32 to vector<1x1x128xf32>
    %229 = arith.select %226, %227, %228 : vector<1x1x128xi1>, vector<1x1x128xf32>
    %c9_i32 = arith.constant 9 : i32
    %230 = vector.broadcast %c9_i32 : i32 to vector<1x1x128xi32>
    %231 = arith.cmpi eq, %184, %230 : vector<1x1x128xi32>
    %cst_55 = arith.constant 0.000000e+00 : f32
    %232 = vector.broadcast %167 : f32 to vector<1x1x128xf32>
    %233 = vector.broadcast %cst_55 : f32 to vector<1x1x128xf32>
    %234 = arith.select %231, %232, %233 : vector<1x1x128xi1>, vector<1x1x128xf32>
    %c10_i32 = arith.constant 10 : i32
    %235 = vector.broadcast %c10_i32 : i32 to vector<1x1x128xi32>
    %236 = arith.cmpi eq, %184, %235 : vector<1x1x128xi32>
    %cst_56 = arith.constant 0.000000e+00 : f32
    %237 = vector.broadcast %172 : f32 to vector<1x1x128xf32>
    %238 = vector.broadcast %cst_56 : f32 to vector<1x1x128xf32>
    %239 = arith.select %236, %237, %238 : vector<1x1x128xi1>, vector<1x1x128xf32>
    %c11_i32 = arith.constant 11 : i32
    %240 = vector.broadcast %c11_i32 : i32 to vector<1x1x128xi32>
    %241 = arith.cmpi eq, %184, %240 : vector<1x1x128xi32>
    %cst_57 = arith.constant 0.000000e+00 : f32
    %242 = vector.broadcast %176 : f32 to vector<1x1x128xf32>
    %243 = vector.broadcast %cst_57 : f32 to vector<1x1x128xf32>
    %244 = arith.select %241, %242, %243 : vector<1x1x128xi1>, vector<1x1x128xf32>
    %245 = arith.addf %189, %194 : vector<1x1x128xf32>
    %246 = arith.addf %199, %204 : vector<1x1x128xf32>
    %247 = arith.addf %209, %214 : vector<1x1x128xf32>
    %248 = arith.addf %219, %224 : vector<1x1x128xf32>
    %249 = arith.addf %229, %234 : vector<1x1x128xf32>
    %250 = arith.addf %239, %244 : vector<1x1x128xf32>
    %251 = arith.addf %245, %246 : vector<1x1x128xf32>
    %252 = arith.addf %247, %248 : vector<1x1x128xf32>
    %253 = arith.addf %249, %250 : vector<1x1x128xf32>
    %254 = arith.addf %251, %252 : vector<1x1x128xf32>
    %255 = arith.addf %254, %253 : vector<1x1x128xf32>
    %c0_58 = arith.constant 0 : index
    %c0_59 = arith.constant 0 : index
    %c0_60 = arith.constant 0 : index
    %256 = vector.load %arg4[%c0_58, %c0_59, %c0_60] : memref<1x1x128xf32, #tpu.memory_space<vmem>>, vector<1x1x128xf32>
    tpu.vector_store %arg4[%c0_58, %c0_59, %c0_60], %255 {strides = array<i32>} : memref<1x1x128xf32, #tpu.memory_space<vmem>>, vector<1x1x128xf32>,
    return
  }
  func.func @transform_0(%arg0: i32) -> (i32, i32, i32) {
    %c0_i32 = arith.constant 0 : i32
    %c0_i32_0 = arith.constant 0 : i32
    %c0_i32_1 = arith.constant 0 : i32
    return %arg0, %c0_i32, %c0_i32_0 : i32, i32, i32
  }
  func.func @transform_1(%arg0: i32) -> (i32, i32, i32) {
    %c0_i32 = arith.constant 0 : i32
    %c0_i32_0 = arith.constant 0 : i32
    %c0_i32_1 = arith.constant 0 : i32
    return %arg0, %c0_i32, %c0_i32_0 : i32, i32, i32
  }
  func.func @transform_2(%arg0: i32) -> (i32, i32, i32) {
    %c0_i32 = arith.constant 0 : i32
    %c0_i32_0 = arith.constant 0 : i32
    %c0_i32_1 = arith.constant 0 : i32
    return %arg0, %c0_i32, %c0_i32_0 : i32, i32, i32
  }
  func.func @transform_3(%arg0: i32) -> (i32, i32, i32) {
    %c0_i32 = arith.constant 0 : i32
    %c0_i32_0 = arith.constant 0 : i32
    %c0_i32_1 = arith.constant 0 : i32
    return %arg0, %c0_i32, %c0_i32_0 : i32, i32, i32
  }
  func.func @transform_4(%arg0: i32) -> (i32, i32, i32) {
    %c0_i32 = arith.constant 0 : i32
    %c0_i32_0 = arith.constant 0 : i32
    %c0_i32_1 = arith.constant 0 : i32
    return %arg0, %c0_i32, %c0_i32_0 : i32, i32, i32
  }
}

</mosaic_0001>

<bundles_post_ra>
// kernel: tpu_custom_call.1
= control target key start
LH: loop header
LB: loop body
LE: loop exit
PB: predicated region body
PF: predicated region fallthrough
CT: control target
= control target key end

     0   :  { %10 = vsyncpa [#allocation3], 0  ;;  %s1410_s0 = inlined_call_operand.vmem [shape: f32[2,9,9], index: 0, kind: input, shape index: {}]   ;;  %s1411_s1 = inlined_call_operand.vmem [shape: f32[2,9,9], index: 1, kind: input, shape index: {}]   ;;  %s1412_s2 = inlined_call_operand.vmem [shape: f32[2,2,9], index: 2, kind: input, shape index: {}]   ;;  %s1413_s3 = inlined_call_operand.hbm [shape: f32[2,1,128], index: 3, kind: output, shape index: {0}]   ;;  %s1414_s4 = inlined_call_operand.hbm [shape: f32[2,1,9], index: 4, kind: output, shape index: {1}]  }
   0x1   :  { %12 = vsyncpa [#allocation3 + $0x1], 0 }
   0x2   :  { %13 = vsyncpa [#allocation5], 0 }
   0x3   :  { %15 = vsyncpa [#allocation5 + $0x1], 0  ;;  %s1076_s15 = smov 0   ;;  %s1078_s16 = smov 0  }
   0x4   :  { %s1080_s17 = smov 0   ;;  %s1082_s18 = smov 0  }
   0x5 LB: > { %s1097_s19 = sadd.s32 4294967295, %s1048_s18   ;;  %s849_s20 = sadd.s32 4294967294, %s1048_s18   ;;  %s1048_s18 = sphi %s1082_s18, %s1422_s18   ;;  %s1044_s17 = sphi %s1080_s17, %s1421_s17   ;;  %s1040_s16 = sphi %s1078_s16, %s1420_s16   ;;  %s1036_s15 = sphi %s1076_s15, %s1419_s15  }
   0x6   : > { %s1101_s21 = sadd.s32 1, %s1048_s18   ;;  %s106_s22 = sadd.s32 1, %s1044_s17 }
   0x7   : > { %s103_s23 = ssub.s32 %s1048_s18, %s1101_s21  ;;  %p116_p0 = scmp.ne.s32.totalorder %s1044_s17, %s1040_s16 }
   0x8   : > { %p104_p1 = scmp.eq.s32.totalorder %s103_s23, 0  ;;  %p117_p2 = scmp.eq.s32.totalorder %s1097_s19, 1 }
   0x9   : > { %p122_p3 = scmp.ne.s32.totalorder %s1040_s16, %s1036_s15  ;;  %p123_p4 = scmp.eq.s32.totalorder %s849_s20, 1 }
   0xa   : > { %s1112_s24 = scalar_select %p104_p1, %s1044_s17, %s106_s22  }
   0xb   : > { %p1114_p5 = por %p117_p2, %p116_p0  ;;  %p1118_p6 = por %p123_p4, %p122_p3 }
   0xc   : > { %p852_p7 = scmp.ge.s32.totalorder %s1048_s18, 1  ;;  %p190_p8 = scmp.lt.s32.totalorder %s1048_s18, 3 }
   0xe   : > { %p191_p9 = pnand %p852_p7, %p190_p8 }
   0xf   : > { %p228_p10 = scmp.lt.s32.totalorder (!%p191_p9), %s1097_s19, 1  ;;  %s1328_s13 = sand.u32 (!%p191_p9), 1, %s1040_s16  }
  0x10   : > { %194 = sbr.rel (%p191_p9) target bundleno = 855 (0x357), region = 32  ;;  %s227_s14 = scalar_lea.vmem (!%p191_p9), [#allocation4], %s1328_s13 }
  0x11   : > { %s738_s23 = scalar_lea.hbm (!%p191_p9), %s1414_s4, %s1097_s19  ;;  %s974_s8 = scalar_lea.hbm (!%p191_p9), %s1414_s4, 2 }
  0x15   : > { %v247_v0 = vlaneseq  ;;  %s229_s27 = scalar_select %p228_p10, %s1097_s19, 1  ;;  %vm269_vm1 = vcmask 72704   ;;  %vm273_vm2 = vcmask 65536  }
  0x17   : > { %v1126_v1 = vshrl.u32 %v247_v0, 7  ;;  %v1128_v2 = vand.u32 127, %v247_v0  ;;  %s857_s28 = sshll.u32 %s229_s27, 1  ;;  %s863_s29 = sshll.u32 %s229_s27, 4 }
  0x18   : > { %s241_s6 = scalar_lea.vmem %s1412_s2, %s857_s28  ;;  %s232_s9 = scalar_lea.vmem %s1410_s0, %s863_s29 }
  0x19   : > { %v246_v3 = vld [vmem:[%s241_s6] sm:$0x3]  ;;  %vm263_vm0 = vcmp.eq.s32.totalorder %v1126_v1, %v1128_v2  ;;  %v243_v4 = vld [vmem:[%s232_s9 + $0x8] sm:$0x1]  ;;  %v1141_v8 = vadd.s32 8, %v1126_v1  ;;  %vm254_vm4 = vcmp.lt.s32.totalorder %v1128_v2, 8  ;;  %s237_s12 = scalar_lea.vmem %s1411_s1, %s863_s29  ;;  %v510_v54 = vcvt.s32.f32 %v1126_v1 }
  0x1a   : > { %v266_v5 = vperm.slane %v246_v3, 0  ;;  %v1138_v6 = vperm.slane %v246_v3, 1  ;;  %v280_v7 = vmul.f32 0.0, %v243_v4  ;;  %v1164_v15 = vsel %vm254_vm4, %v246_v3, 0.0  ;;  %v242_v16 = vld [vmem:[%s232_s9] sm:$0xff]  ;;  %s740_s27 = sshll.u32 %s227_s14, 4  ;;  %s741_s27 = int_to_ptr.vmem [resolvable:$true] %s740_s27 }
  0x1b   : > { %vm264_vm3 = vcmp.eq.s32.totalorder %v1141_v8, %v1128_v2  ;;  %v1166_v17 = vld [vmem:[%s237_s12] sm:$0xff]  ;;  %v286_v18 = vperm.slane %v1164_v15, 1  ;;  %v1183_v26 = vld [vmem:[%s237_s12 + $0x8] sm:$0x1]  ;;  %v511_v55 = vcvt.s32.f32 %v1141_v8  ;;  %s742_s28 = sshll.u32 %s738_s23, 4  ;;  %s717_s29 = scalar_lea.sflag [#allocation5], %s1328_s13  ;;  %s743_s28 = int_to_ptr.hbm [resolvable:$true] %s742_s28 }
  0x1c   : > { %v267_v9 = vsel %vm263_vm0, %v266_v5, 0.0  ;;  %v1147_v10 = vmul.f32 %v1138_v6, %v280_v7  ;;  %v268_v13 = vsel %vm264_vm3, %v266_v5, 0.0  ;;  %s968_s30 = sshra.s32 %s743_s28, 4  ;;  %s969_s30 = int_to_ptr.hbm [resolvable:$true] %s968_s30 }
  0x1d   : > { %v270_v11 = vsel %vm269_vm1, %v267_v9, 0.0  ;;  %v274_v14 = vsel %vm273_vm2, %v268_v13, 0.0  ;;  %s970_s5 = scalar_lea.hbm %s969_s30, 1  ;;  %p975_p0 = scmp.lt.s32.totalorder %s969_s30, %s1414_s4 }
  0x1e   : > { %271 = vadd.xlane.f32.xlu0 %v270_v11  ;;  %v292_v12 = vsel %vm273_vm2, %v1147_v10, -inf  ;;  %p971_p11 = scmp.ne.s32.totalorder %s969_s30, %s970_s5  ;;  %p976_p1 = scmp.lt.s32.totalorder %s974_s8, %s970_s5 }
  0x1f   : > { %293 = vmax.xlane.f32.xlu1 %v292_v12 }
  0x20   : > { %p972_p12 = pnand %p971_p11, %p1114_p5  ;;  %p977_p2 = por %p976_p1, %p975_p0 }
  0x22   : > { %p973_p13 = pneg %p972_p12 }
  0x24   : > { %p978_p3 = pnand %p977_p2, %p973_p13 }
  0x27   : > { %275 = vadd.xlane.f32.xlu1 %v274_v14 }
  0x91   : > { %v1169_v19 = vpop.xlane.xlu0 %271 }
  0x92   : > { %v1171_v20 = vpop.xlane.xlu1 %293  ;;  %v279_v21 = vmul.f32 %v1169_v19, %v242_v16  ;;  %v391_v22 = vmul.f32 %v1169_v19, %v1166_v17 }
  0x94   : > { %v1177_v23 = vmul.f32 %v1138_v6, %v279_v21  ;;  %v1179_v24 = vmul.f32 %v391_v22, %v286_v18  ;;  %v1186_v27 = vmul.f32 %v391_v22, %v1138_v6  ;;  %v287_v29 = vmul.f32 %v286_v18, %v279_v21 }
  0x96   : > { %v289_v25 = vsel %vm269_vm1, %v1177_v23, -inf  ;;  %v544_v34 = vsel %vm269_vm1, %v1179_v24, -inf  ;;  %v343_v35 = vsel %vm269_vm1, %v287_v29, -inf  ;;  %v512_v36 = vsel %vm269_vm1, %v1186_v27, -inf }
  0x97   : > { %290 = vmax.xlane.f32.xlu0 %v289_v25  ;;  %v485_v39 = vsel %vm269_vm1, %v1179_v24, 0.0 }
  0x9a   : > { %v276_v28 = vpop.xlane.xlu1 %275 }
  0x9b   : > { %v285_v30 = vmul.f32 %v276_v28, %v243_v4  ;;  %v396_v31 = vmul.f32 %v276_v28, %v1183_v26 }
  0x9d   : > { %v288_v32 = vmul.f32 %v286_v18, %v285_v30  ;;  %v1189_v33 = vmul.f32 %v396_v31, %v286_v18 }
  0x9f   : > { %v344_v37 = vsel %vm273_vm2, %v288_v32, -inf  ;;  %v545_v38 = vsel %vm273_vm2, %v1189_v33, -inf  ;;  %513 = vmax.xlane.f32.xlu0 %v512_v36  ;;  %v486_v40 = vsel %vm273_vm2, %v1189_v33, 0.0 }
  0xa0   : > { %v345_v41 = vmax.f32 %v343_v35, %v344_v37  ;;  %v546_v42 = vmax.f32 %v544_v34, %v545_v38  ;;  %v1203_v43 = vadd.f32 %v486_v40, %v485_v39 }
  0xa2   : > { %v346_v44 = vrot.slane %v345_v41, 4  ;;  %v547_v45 = vrot.slane %v546_v42, 4 }
  0xa4   : > { %v347_v46 = vmax.f32 %v345_v41, %v346_v44  ;;  %v548_v47 = vmax.f32 %v546_v42, %v547_v45 }
  0xa6   : > { %v348_v48 = vrot.slane %v347_v46, 2  ;;  %v549_v49 = vrot.slane %v548_v47, 2 }
  0xa8   : > { %v349_v50 = vmax.f32 %v347_v46, %v348_v48  ;;  %v550_v51 = vmax.f32 %v548_v47, %v549_v49 }
  0xaa   : > { %v350_v52 = vrot.slane %v349_v50, 1  ;;  %v551_v53 = vrot.slane %v550_v51, 1 }
  0xac   : > { %v351_v56 = vmax.f32 %v349_v50, %v350_v52  ;;  %v552_v57 = vmax.f32 %v550_v51, %v551_v53 }
  0xae   : > { %v352_v58 = vsub.f32 %v287_v29, %v351_v56  ;;  %v353_v59 = vsub.f32 %v288_v32, %v351_v56  ;;  %vm553_vm5 = vcmp.eq.f32.partialorder %v1179_v24, %v552_v57  ;;  %vm554_vm6 = vcmp.eq.f32.partialorder %v1189_v33, %v552_v57 }
  0xaf   : > { %v555_v60 = vsel %vm553_vm5, %v510_v54, 9.0  ;;  %v556_v61 = vsel %vm554_vm6, %v511_v55, 9.0 }
  0xb0   : > { %v354_v62 = vmul.f32 1.442695, %v352_v58  ;;  %v356_v63 = vmul.f32 1.442695, %v353_v59  ;;  %v557_v0 = vsel %vm269_vm1, %v555_v60, inf  ;;  %v558_v3 = vsel %vm273_vm2, %v556_v61, inf }
  0xb1   : > { %v559_v4 = vmin.f32 %v557_v0, %v558_v3  ;;  %v392_v61 = vmul.f32 0.0, %v1183_v26 }
  0xb2   : > { %934 = vpow2.f32 %v354_v62 }
  0xb3   : > { %936 = vpow2.f32 %v356_v63  ;;  %v1238_v0 = vmul.f32 %v392_v61, %v1138_v6 }
  0xb8   : > { %v935_v5 = vpop.eup %934 }
  0xb9   : > { %v937_v7 = vpop.eup %936  ;;  %v358_v9 = vsel %vm269_vm1, %v935_v5, 0.0 }
  0xba   : > { %v359_v11 = vsel %vm273_vm2, %v937_v7, 0.0 }
  0xbb   : > { %v360_v12 = vadd.f32 %v359_v11, %v358_v9 }
  0xbd   : > { %v361_v13 = vrot.slane %v360_v12, 4 }
  0xbf   : > { %v362_v14 = vadd.f32 %v361_v13, %v360_v12 }
  0xc1   : > { %v363_v16 = vrot.slane %v362_v14, 2 }
  0xc3   : > { %v364_v18 = vadd.f32 %v363_v16, %v362_v14 }
  0xc5   : > { %v365_v21 = vrot.slane %v364_v18, 1 }
  0xc7   : > { %v366_v22 = vadd.f32 %v365_v21, %v364_v18 }
  0xc9   : > { %938 = vrcp.f32 %v366_v22  ;;  %v378_v34 = vand.u32 2147483648, %v366_v22  ;;  %v376_v37 = vand.u32 2147483647, %v366_v22  ;;  %vm372_vm8 = vweird.f32 %v366_v22 }
  0xca   : > { %940 = vlog2.f32 %v366_v22 }
  0xcb   : > { %v379_v41 = vor.u32 1.1754944e-38, %v378_v34  ;;  %vm377_vm10 = vcmp.eq.f32.partialorder %v376_v37, 8.507059e+37  ;;  %v1258_v34 = vcvt.s32.f32 %v1128_v2 }
  0xcf   : > { %v939_v25 = vpop.eup %938 }
  0xd0   : > { %v941_v28 = vpop.eup %940  ;;  %v368_v29 = vmul.f32 %v939_v25, %v366_v22  ;;  %vm373_vm7 = vweird.f32 %v939_v25 }
  0xd1   : > { %v384_v30 = vmul.f32 0.6931472, %v941_v28  ;;  %vm374_vm9 = vmor %vm372_vm8, %vm373_vm7  ;;  %v296_v28 = vsub.f32 %v1147_v10, %v1171_v20 }
  0xd2   : > { %v369_v31 = vsub.f32 1.0, %v368_v29 }
  0xd3   : > { %v1217_v32 = vsub.f32 %v352_v58, %v384_v30  ;;  %v386_v35 = vsub.f32 %v353_v59, %v384_v30  ;;  %v560_v59 = vrot.slane %v559_v4, 4 }
  0xd4   : > { %v370_v36 = vmul.f32 %v939_v25, %v369_v31  ;;  %v299_v31 = vmul.f32 1.442695, %v296_v28 }
  0xd5   : > { %v415_v38 = vmul.f32 %v1179_v24, %v1217_v32  ;;  %v416_v39 = vmul.f32 %v1189_v33, %v386_v35  ;;  %v561_v63 = vmin.f32 %v559_v4, %v560_v59  ;;  %v515_v4 = vsel %vm273_vm2, %v1238_v0, -inf }
  0xd6   : > { %v371_v40 = vadd.f32 %v939_v25, %v370_v36  ;;  %516 = vmax.xlane.f32.xlu1 %v515_v4 }
  0xd7   : > { %v417_v42 = vsel %vm269_vm1, %v415_v38, 0.0  ;;  %v418_v44 = vsel %vm273_vm2, %v416_v39, 0.0  ;;  %v562_v11 = vrot.slane %v561_v63, 2 }
  0xd8   : > { %v375_v45 = vsel %vm374_vm9, %v939_v25, %v371_v40  ;;  %v1224_v46 = vadd.f32 %v418_v44, %v417_v42 }
  0xd9   : > { %v380_v47 = vsel %vm377_vm10, %v379_v41, %v375_v45  ;;  %v563_v14 = vmin.f32 %v561_v63, %v562_v11 }
  0xda   : > { %v1226_v48 = vmul.f32 %v935_v5, %v380_v47  ;;  %v1228_v49 = vmul.f32 %v937_v7, %v380_v47 }
  0xdb   : > { %v564_v18 = vrot.slane %v563_v14, 1 }
  0xdc   : > { %v566_v50 = vsel %vm269_vm1, %v1226_v48, -inf  ;;  %v567_v51 = vsel %vm273_vm2, %v1228_v49, -inf }
  0xdd   : > { %v568_v52 = vmax.f32 %v566_v50, %v567_v51  ;;  %v1248_v22 = vmin.f32 %v563_v14, %v564_v18 }
  0xdf   : > { %v569_v53 = vrot.slane %v568_v52, 4 }
  0xe1   : > { %v570_v56 = vmax.f32 %v568_v52, %v569_v53 }
  0xe3   : > { %v571_v57 = vrot.slane %v570_v56, 2 }
  0xe5   : > { %v572_v58 = vmax.f32 %v570_v56, %v571_v57 }
  0xe7   : > { %v573_v60 = vrot.slane %v572_v58, 1 }
  0xe9   : > { %v574_v62 = vmax.f32 %v572_v58, %v573_v60 }
  0xeb   : > { %vm575_vm11 = vcmp.eq.f32.partialorder %v1226_v48, %v574_v62  ;;  %vm576_vm12 = vcmp.eq.f32.partialorder %v1228_v49, %v574_v62 }
  0xec   : > { %v577_v3 = vsel %vm575_vm11, %v510_v54, 9.0  ;;  %v578_v5 = vsel %vm576_vm12, %v511_v55, 9.0  ;;  %vm599_vm12 = vcmask 7168  }
  0xed   : > { %v579_v7 = vsel %vm269_vm1, %v577_v3, inf  ;;  %v580_v9 = vsel %vm273_vm2, %v578_v5, inf }
  0xee   : > { %v581_v12 = vmin.f32 %v579_v7, %v580_v9 }
  0xf0   : > { %v582_v13 = vrot.slane %v581_v12, 4 }
  0xf2   : > { %v583_v6 = vmin.f32 %v581_v12, %v582_v13 }
  0xf4   : > { %v584_v16 = vrot.slane %v583_v6, 2 }
  0xf6   : > { %v585_v21 = vmin.f32 %v583_v6, %v584_v16 }
  0xf8   : > { %v586_v54 = vrot.slane %v585_v21, 1 }
  0xfa   : > { %v1250_v55 = vmin.f32 %v585_v21, %v586_v54 }
  0xfc   : > { %vm594_vm13 = vcmp.eq.f32.partialorder %v1250_v55, %v1248_v22 }
 0x10a   : > { %v291_v25 = vpop.xlane.xlu0 %290 }
 0x10b   : > { %v295_v29 = vsub.f32 %v1177_v23, %v291_v25 }
 0x10d   : > { %v297_v30 = vmul.f32 1.442695, %v295_v29 }
 0x10f   : > { %942 = vpow2.f32 %v297_v30 }
 0x110   : > { %944 = vpow2.f32 %v299_v31 }
 0x112   : > { %v514_v35 = vpop.xlane.xlu0 %513 }
 0x113   : > { %vm518_vm14 = vcmp.eq.f32.partialorder %v1186_v27, %v514_v35 }
 0x114   : > { %v520_v36 = vsel %vm518_vm14, %v1258_v34, 9.0 }
 0x115   : > { %v943_v37 = vpop.eup %942  ;;  %v522_v38 = vsel %vm269_vm1, %v520_v36, inf }
 0x116   : > { %523 = vmin.xlane.f32.xlu1 %v522_v38  ;;  %v301_v10 = vsel %vm269_vm1, %v943_v37, 0.0  ;;  %v945_v20 = vpop.eup %944 }
 0x117   : > { %302 = vadd.xlane.f32.xlu2 %v301_v10  ;;  %v304_v23 = vsel %vm273_vm2, %v945_v20, 0.0 }
 0x11f   : > { %305 = vadd.xlane.f32.xlu2 %v304_v23 }
 0x149   : > { %v517_v58 = vpop.xlane.xlu1 %516 }
 0x14a   : > { %vm519_vm6 = vcmp.eq.f32.partialorder %v1238_v0, %v517_v58  ;;  %v461_v58 = vsel %vm269_vm1, %v1166_v17, 0.0 }
 0x14b   : > { %v521_v12 = vsel %vm519_vm6, %v1258_v34, 9.0  ;;  %vm601_vm6 = vcmask 0  }
 0x14c   : > { %v525_v54 = vsel %vm273_vm2, %v521_v12, inf }
 0x18a   : > { %v303_v39 = vpop.xlane.xlu2 %302 }
 0x18b   : > { %946 = vrcp.f32 %v303_v39  ;;  %v318_v53 = vand.u32 2147483648, %v303_v39  ;;  %vm312_vm5 = vweird.f32 %v303_v39  ;;  %v316_v59 = vand.u32 2147483647, %v303_v39 }
 0x18c   : > { %948 = vlog2.f32 %v303_v39 }
 0x18d   : > { %v319_v7 = vor.u32 1.1754944e-38, %v318_v53  ;;  %vm317_vm8 = vcmp.eq.f32.partialorder %v316_v59, 8.507059e+37  ;;  %v462_v59 = vsel %vm273_vm2, %v1183_v26, 0.0  ;;  %v1050_v26 = vmov 0.0  }
 0x191   : > { %v947_v40 = vpop.eup %946 }
 0x192   : > { %v949_v41 = vpop.eup %948  ;;  %v308_v42 = vmul.f32 %v947_v40, %v303_v39  ;;  %v306_v44 = vpop.xlane.xlu2 %305  ;;  %vm313_vm15 = vweird.f32 %v947_v40 }
 0x193   : > { %950 = vrcp.f32 %v306_v44  ;;  %v338_v47 = vmul.f32 0.6931472, %v949_v41  ;;  %vm1267_vm7 = vmor %vm312_vm5, %vm313_vm15  ;;  %v332_v4 = vand.u32 2147483648, %v306_v44  ;;  %v330_v14 = vand.u32 2147483647, %v306_v44 }
 0x194   : > { %v309_v45 = vsub.f32 1.0, %v308_v42  ;;  %952 = vlog2.f32 %v306_v44  ;;  %v399_v42 = vmul.f32 %v1179_v24, %v1169_v19 }
 0x195   : > { %v341_v51 = vsub.f32 %v295_v29, %v338_v47  ;;  %v333_v21 = vor.u32 1.1754944e-38, %v332_v4  ;;  %vm331_vm11 = vcmp.eq.f32.partialorder %v330_v14, 8.507059e+37 }
 0x196   : > { %v310_v50 = vmul.f32 %v947_v40, %v309_v45  ;;  %v497_v4 = vsel %vm269_vm1, %v399_v42, 0.0 }
 0x197   : > { %v387_v56 = vmax.f32 %v341_v51, %v1217_v32  ;;  %v401_v35 = vmul.f32 %v1186_v27, %v341_v51 }
 0x198   : > { %v311_v52 = vadd.f32 %v947_v40, %v310_v50 }
 0x199   : > { %v951_v57 = vpop.eup %950  ;;  %v389_v63 = vsel %vm254_vm4, %v387_v56, %v341_v51  ;;  %vm326_vm4 = vweird.f32 %v306_v44  ;;  %v403_v39 = vsel %vm269_vm1, %v401_v35, 0.0 }
 0x19a   : > { %v953_v60 = vpop.eup %952  ;;  %v322_v62 = vmul.f32 %v951_v57, %v306_v44  ;;  %v528_v3 = vsel %vm269_vm1, %v389_v63, -inf  ;;  %v315_v32 = vsel %vm1267_vm7, %v947_v40, %v311_v52  ;;  %vm327_vm9 = vweird.f32 %v951_v57 }
 0x19b   : > { %v340_v5 = vmul.f32 0.6931472, %v953_v60  ;;  %529 = vmax.xlane.f32.xlu2 %v528_v3  ;;  %v320_v6 = vsel %vm317_vm8, %v319_v7, %v315_v32  ;;  %vm328_vm10 = vmor %vm326_vm4, %vm327_vm9 }
 0x19c   : > { %v323_v9 = vsub.f32 1.0, %v322_v62  ;;  %v335_v25 = vmul.f32 %v943_v37, %v320_v6  ;;  %v400_v37 = vmul.f32 0.0, %v1189_v33  ;;  %v613_v33 = vsel %vm599_vm12, %v1169_v19, 0.0  ;;  %v524_v6 = vpop.xlane.xlu1 %523 }
 0x19d   : > { %v342_v11 = vsub.f32 %v296_v28, %v340_v5  ;;  %v473_v5 = vsel %vm269_vm1, %v1186_v27, 0.0 }
 0x19e   : > { %v324_v13 = vmul.f32 %v951_v57, %v323_v9  ;;  %v443_v36 = vsub.f32 %v1226_v48, %v335_v25  ;;  %v498_v17 = vsel %vm273_vm2, %v400_v37, 0.0  ;;  %v860_v9 = vsel %vm594_vm13, 1.0, %v1050_v26 }
 0x19f   : > { %v531_v16 = vsel %vm273_vm2, %v342_v11, -inf  ;;  %v402_v28 = vmul.f32 %v1238_v0, %v342_v11  ;;  %v499_v12 = vadd.f32 %v498_v17, %v497_v4 }
 0x1a0   : > { %v325_v18 = vadd.f32 %v951_v57, %v324_v13  ;;  %532 = vmax.xlane.f32.xlu0 %v531_v16  ;;  %v445_v40 = vand.u32 2147483647, %v443_v36  ;;  %v625_v13 = vmul.f32 %v860_v9, %v1164_v15 }
 0x1a1   : > { %v404_v10 = vsel %vm273_vm2, %v402_v28, 0.0 }
 0x1a2   : > { %v329_v29 = vsel %vm328_vm10, %v951_v57, %v325_v18  ;;  %v405_v41 = vadd.f32 %v404_v10, %v403_v39 }
 0x1a3   : > { %v334_v30 = vsel %vm331_vm11, %v333_v21, %v329_v29  ;;  %526 = vmin.xlane.f32.xlu2 %v525_v54 }
 0x1a4   : > { %v336_v31 = vmul.f32 %v945_v20, %v334_v30  ;;  %v447_v20 = vmul.f32 %v445_v40, %v399_v42 }
 0x1a6   : > { %v444_v38 = vsub.f32 %v1228_v49, %v336_v31  ;;  %v449_v48 = vsel %vm269_vm1, %v447_v20, 0.0 }
 0x1a8   : > { %v446_v23 = vand.u32 2147483647, %v444_v38 }
 0x1aa   : > { %v448_v44 = vmul.f32 %v446_v23, %v400_v37 }
 0x1ab   : > { %406 = vadd.xlane.f32.xlu2 %v405_v41 }
 0x1ac   : > { %v450_v45 = vsel %vm273_vm2, %v448_v44, 0.0 }
 0x1ad   : > { %v451_v49 = vadd.f32 %v450_v45, %v449_v48  ;;  %v640_v45 = vrot.slane %v1164_v15, 1 }
 0x1b3   : > { %452 = vadd.xlane.f32.xlu2 %v451_v49 }
 0x1bb   : > { %488 = vadd.xlane.f32.xlu2 %v1203_v43  ;;  %v429_v43 = vmul.f32 %v1186_v27, %v389_v63 }
 0x1bd   : > { %v431_v57 = vsel %vm269_vm1, %v429_v43, 0.0 }
 0x1be   : > { %v433_v60 = vadd.f32 %v431_v57, %v404_v10 }
 0x1c3   : > { %616 = vadd.xlane.f32.xlu2 %v613_v33 }
 0x20e   : > { %v530_v47 = vpop.xlane.xlu2 %529 }
 0x20f   : > { %vm534_vm14 = vcmp.eq.f32.partialorder %v389_v63, %v530_v47 }
 0x210   : > { %v536_v24 = vsel %vm534_vm14, %v1258_v34, 9.0 }
 0x211   : > { %v538_v50 = vsel %vm269_vm1, %v536_v24, inf }
 0x212   : > { %539 = vmin.xlane.f32.xlu0 %v538_v50 }
 0x213   : > { %v533_v51 = vpop.xlane.xlu0 %532 }
 0x214   : > { %vm535_vm15 = vcmp.eq.f32.partialorder %v342_v11, %v533_v51 }
 0x215   : > { %v537_v52 = vsel %vm535_vm15, %v1258_v34, 9.0  ;;  %v463_v34 = vadd.f32 %v462_v59, %v461_v58 }
 0x216   : > { %v541_v53 = vsel %vm273_vm2, %v537_v52, inf  ;;  %v527_v56 = vpop.xlane.xlu2 %526 }
 0x217   : > { %542 = vmin.xlane.f32.xlu1 %v541_v53  ;;  %v642_v53 = vsel %vm273_vm2, %v640_v45, 0.0 }
 0x21a   : > { %420 = vadd.xlane.f32.xlu0 %v1224_v46  ;;  %v474_v46 = vsel %vm273_vm2, %v1238_v0, 0.0  ;;  %v627_v0 = vrot.slane %v625_v13, 1 }
 0x21b   : > { %v475_v32 = vadd.f32 %v474_v46, %v473_v5 }
 0x21c   : > { %v629_v14 = vsel %vm273_vm2, %v627_v0, 0.0 }
 0x21e   : > { %v407_v61 = vpop.xlane.xlu2 %406 }
 0x21f   : > { %434 = vadd.xlane.f32.xlu1 %v433_v60  ;;  %v408_v62 = vrot.slane %v407_v61, 4 }
 0x221   : > { %v409_v3 = vadd.f32 %v408_v62, %v407_v61 }
 0x222   : > { %464 = vadd.xlane.f32.xlu0 %v463_v34 }
 0x223   : > { %v410_v63 = vrot.slane %v409_v3, 2 }
 0x225   : > { %v411_v7 = vadd.f32 %v410_v63, %v409_v3 }
 0x226   : > { %v453_v16 = vpop.xlane.xlu2 %452 }
 0x227   : > { %476 = vadd.xlane.f32.xlu1 %v475_v32  ;;  %v412_v11 = vrot.slane %v411_v7, 1  ;;  %v454_v55 = vrot.slane %v453_v16, 4 }
 0x229   : > { %v413_v27 = vadd.f32 %v412_v11, %v411_v7  ;;  %v455_v38 = vadd.f32 %v454_v55, %v453_v16 }
 0x22a   : > { %500 = vadd.xlane.f32.xlu0 %v499_v12 }
 0x22b   : > { %865 = vpush %v413_v27  ;;  %v456_v42 = vrot.slane %v455_v38, 2 }
 0x22e   : > { %v489_v10 = vpop.xlane.xlu2 %488 }
 0x22f   : > { %v490_v44 = vrot.slane %v489_v10, 4 }
 0x231   : > { %v491_v51 = vadd.f32 %v490_v44, %v489_v10 }
 0x232   : > { %630 = vadd.xlane.f32.xlu0 %v629_v14 }
 0x233   : > { %v492_v62 = vrot.slane %v491_v51, 2 }
 0x235   : > { %v493_v11 = vadd.f32 %v492_v62, %v491_v51 }
 0x237   : > { %v494_v16 = vrot.slane %v493_v11, 1 }
 0x285   : > { %v540_v18 = vpop.xlane.xlu0 %539 }
 0x286   : > { %vm588_vm5 = vcmp.eq.f32.partialorder %v540_v18, %v524_v6  ;;  %v652_v22 = vsel %vm263_vm0, %v540_v18, 0.0 }
 0x287   : > { %v858_v21 = vsel %vm588_vm5, 1.0, %v1050_v26  ;;  %v654_v28 = vsel %vm269_vm1, %v652_v22, 0.0 }
 0x288   : > { %v597_v25 = vmul.f32 %v858_v21, %v1169_v19 }
 0x28a   : > { %v543_v54 = vpop.xlane.xlu1 %542  ;;  %v600_v19 = vsel %vm599_vm12, %v597_v25, 0.0 }
 0x28b   : > { %vm589_vm13 = vcmp.eq.f32.partialorder %v543_v54, %v527_v56  ;;  %v653_v29 = vsel %vm264_vm3, %v543_v54, 0.0  ;;  %v457_v56 = vadd.f32 %v456_v42, %v455_v38  ;;  %v495_v54 = vadd.f32 %v494_v16, %v493_v11 }
 0x28c   : > { %v859_v30 = vsel %vm589_vm13, 1.0, %v1050_v26  ;;  %v655_v31 = vsel %vm273_vm2, %v653_v29, 0.0 }
 0x28d   : > { %v598_v35 = vmul.f32 0.0, %v859_v30  ;;  %v656_v36 = vadd.f32 %v655_v31, %v654_v28  ;;  %v421_v1 = vpop.xlane.xlu0 %420  ;;  %v458_v5 = vrot.slane %v457_v56, 1 }
 0x28e   : > { %v422_v39 = vrot.slane %v421_v1, 4 }
 0x28f   : > { %v657_v23 = vrot.slane %v656_v36, 4  ;;  %v602_v37 = vsel %vm601_vm6, %v598_v35, 0.0  ;;  %v459_v4 = vadd.f32 %v458_v5, %v457_v56 }
 0x290   : > { %v603_v40 = vadd.f32 %v602_v37, %v600_v19  ;;  %v423_v8 = vadd.f32 %v422_v39, %v421_v1 }
 0x291   : > { %v658_v41 = vadd.f32 %v657_v23, %v656_v36 }
 0x292   : > { %v435_v20 = vpop.xlane.xlu1 %434  ;;  %604 = vadd.xlane.f32.xlu1 %v603_v40  ;;  %v424_v49 = vrot.slane %v423_v8, 2 }
 0x293   : > { %v659_v48 = vrot.slane %v658_v41, 2  ;;  %v436_v33 = vrot.slane %v435_v20, 4 }
 0x294   : > { %v425_v50 = vadd.f32 %v424_v49, %v423_v8 }
 0x295   : > { %v660_v47 = vadd.f32 %v659_v48, %v658_v41  ;;  %v437_v24 = vadd.f32 %v436_v33, %v435_v20  ;;  %v465_v52 = vpop.xlane.xlu0 %464 }
 0x296   : > { %v466_v58 = vrot.slane %v465_v52, 4  ;;  %v426_v59 = vrot.slane %v425_v50, 1 }
 0x297   : > { %v661_v43 = vrot.slane %v660_v47, 1  ;;  %v438_v57 = vrot.slane %v437_v24, 2 }
 0x298   : > { %v467_v15 = vadd.f32 %v466_v58, %v465_v52  ;;  %v427_v60 = vadd.f32 %v426_v59, %v425_v50 }
 0x299   : > { %v439_v61 = vadd.f32 %v438_v57, %v437_v24  ;;  %v662_v34 = vadd.f32 %v661_v43, %v660_v47 }
 0x29a   : > { %v477_v3 = vpop.xlane.xlu1 %476  ;;  %643 = vadd.xlane.f32.xlu1 %v642_v53  ;;  %v468_v46 = vrot.slane %v467_v15, 2  ;;  %867 = vpush %v427_v60 }
 0x29b   : > { %v478_v63 = vrot.slane %v477_v3, 4  ;;  %v440_v32 = vrot.slane %v439_v61, 1  ;;  %663 = vst.msk [vmem:[%s227_s14] sm:$0x1] %vm273_vm2, %v662_v34 }
 0x29c   : > { %v469_v26 = vadd.f32 %v468_v46, %v467_v15 }
 0x29d   : > { %v479_v17 = vadd.f32 %v478_v63, %v477_v3  ;;  %v441_v7 = vadd.f32 %v440_v32, %v439_v61  ;;  %v501_v9 = vpop.xlane.xlu0 %500 }
 0x29e   : > { %v502_v27 = vrot.slane %v501_v9, 4  ;;  %v470_v13 = vrot.slane %v469_v26, 1 }
 0x29f   : > { %v480_v12 = vrot.slane %v479_v17, 2  ;;  %869 = vpush %v441_v7 }
 0x2a0   : > { %871 = vpush %v459_v4  ;;  %v503_v0 = vadd.f32 %v502_v27, %v501_v9  ;;  %v471_v14 = vadd.f32 %v470_v13, %v469_v26 }
 0x2a1   : > { %v481_v6 = vadd.f32 %v480_v12, %v479_v17 }
 0x2a2   : > { %v504_v18 = vrot.slane %v503_v0, 2  ;;  %873 = vpush %v471_v14 }
 0x2a3   : > { %v482_v21 = vrot.slane %v481_v6, 1 }
 0x2a4   : > { %v505_v55 = vadd.f32 %v504_v18, %v503_v0 }
 0x2a5   : > { %v483_v22 = vadd.f32 %v482_v21, %v481_v6 }
 0x2a6   : > { %v506_v25 = vrot.slane %v505_v55, 1 }
 0x2a7   : > { %875 = vpush %v483_v22 }
 0x2a8   : > { %877 = vpush %v495_v54  ;;  %v507_v29 = vadd.f32 %v506_v25, %v505_v55 }
 0x2aa   : > { %879 = vpush %v507_v29 }
 0x2ab   : > { %981 = shalt.err (!%p978_p3)
}
 0x2ac   : > { %890 = dma.vmem_to_hbm [thread:$0]  (%p1114_p5), %s741_s27, 16, %s743_s28, %s717_s29   ;;  %v617_v28 = vpop.xlane.xlu2 %616  ;;  %v631_v30 = vpop.xlane.xlu0 %630  ;;  %vm685_vm0 = vcmp.eq.s32.totalorder %v1128_v2, 7  ;;  %vm670_vm1 = vcmp.eq.s32.totalorder %v1128_v2, 2  ;;  %vm673_vm2 = vcmp.eq.s32.totalorder %v1128_v2, 3  ;;  %vm676_vm3 = vcmp.eq.s32.totalorder %v1128_v2, 4 }
 0x2ad   : > { %v618_v31 = vrot.slane %v617_v28, 4  ;;  %v632_v35 = vrot.slane %v631_v30, 4  ;;  %s1351_s11 = spop %865  ;;  %vm682_vm7 = vcmp.eq.s32.totalorder %v1128_v2, 6  ;;  %vm679_vm8 = vcmp.eq.s32.totalorder %v1128_v2, 5  ;;  %s725_s9 = scalar_lea.hbm %s1413_s3, %s1097_s19 }
 0x2ae   : > { %vm664_vm9 = vcmp.eq.s32.totalorder %v1128_v2, 0  ;;  %vm667_vm4 = vcmp.eq.s32.totalorder %v1128_v2, 1  ;;  %v665_v5 = vstv %s1351_s11  ;;  %vm688_vm10 = vcmp.eq.s32.totalorder %v1128_v2, 8  ;;  %s221_s10 = scalar_lea.vmem [#allocation2], %s1328_s13 }
 0x2af   : > { %v619_v36 = vadd.f32 %v618_v31, %v617_v28  ;;  %v633_v38 = vadd.f32 %v632_v35, %v631_v30  ;;  %vm691_vm11 = vcmp.eq.s32.totalorder %v1128_v2, 9  ;;  %vm694_vm12 = vcmp.eq.s32.totalorder %v1128_v2, 10  ;;  %s727_s11 = sshll.u32 %s221_s10, 4  ;;  %s728_s11 = int_to_ptr.vmem [resolvable:$true] %s727_s11 }
 0x2b0   : > { %vm697_vm14 = vcmp.eq.s32.totalorder %v1128_v2, 11  ;;  %v666_v12 = vsel %vm664_vm9, %v665_v5, 0.0 }
 0x2b1   : > { %v620_v1 = vrot.slane %v619_v36, 2  ;;  %v634_v23 = vrot.slane %v633_v38, 2 }
 0x2b3   : > { %v621_v37 = vadd.f32 %v620_v1, %v619_v36  ;;  %v635_v40 = vadd.f32 %v634_v23, %v633_v38 }
 0x2b5   : > { %v622_v44 = vrot.slane %v621_v37, 1  ;;  %v636_v48 = vrot.slane %v635_v40, 1 }
 0x2b7   : > { %v623_v47 = vadd.f32 %v622_v44, %v621_v37  ;;  %v637_v50 = vadd.f32 %v636_v48, %v635_v40 }
 0x2cb   : > { %s1353_s12 = spop %867 }
 0x2cc   : > { %v668_v61 = vstv %s1353_s12  ;;  %s729_s12 = sshll.u32 %s725_s9, 4  ;;  %s730_s12 = int_to_ptr.hbm [resolvable:$true] %s729_s12 }
 0x2cd   : > { %v669_v26 = vsel %vm667_vm4, %v668_v61, 0.0 }
 0x2ce   : > { %v700_v0 = vadd.f32 %v669_v26, %v666_v12 }
 0x2d0   : > { %s870_s14 = spop %869 }
 0x2d1   : > { %s872_s20 = spop %871  ;;  %v671_v43 = vstv %s870_s14  ;;  %s713_s14 = scalar_lea.sflag [#allocation3], %s1328_s13 }
 0x2d2   : > { %v674_v57 = vstv %s872_s20  ;;  %v672_v34 = vsel %vm670_vm1, %v671_v43, 0.0  ;;  %s996_s20 = sshra.s32 %s730_s12, 4  ;;  %s997_s20 = int_to_ptr.hbm [resolvable:$true] %s996_s20 }
 0x2d3   : > { %s874_s22 = spop %873  ;;  %v675_v62 = vsel %vm673_vm2, %v674_v57, 0.0  ;;  %p1003_p9 = scmp.lt.s32.totalorder %s997_s20, %s1413_s3 }
 0x2d4   : > { %v677_v59 = vstv %s874_s22  ;;  %v701_v9 = vadd.f32 %v675_v62, %v672_v34  ;;  %s998_s22 = scalar_lea.hbm %s997_s20, 1 }
 0x2d5   : > { %v678_v46 = vsel %vm676_vm3, %v677_v59, 0.0  ;;  %p999_p4 = scmp.ne.s32.totalorder %s997_s20, %s998_s22 }
 0x2d6   : > { %v706_v21 = vadd.f32 %v701_v9, %v700_v0 }
 0x2d7   : > { %p1000_p7 = pnand %p999_p4, %p1114_p5 }
 0x2d8   : > { %s876_s23 = spop %875 }
 0x2d9   : > { %s878_s27 = spop %877  ;;  %v680_v15 = vstv %s876_s23  ;;  %p1001_p8 = pneg %p1000_p7 }
 0x2da   : > { %v683_v58 = vstv %s878_s27  ;;  %v681_v63 = vsel %vm679_vm8, %v680_v15, 0.0  ;;  %s1002_s27 = scalar_lea.hbm %s1413_s3, 2 }
 0x2db   : > { %s880_s28 = spop %879  ;;  %v684_v3 = vsel %vm682_vm7, %v683_v58, 0.0  ;;  %v702_v4 = vadd.f32 %v681_v63, %v678_v46  ;;  %p1004_p10 = scmp.lt.s32.totalorder %s1002_s27, %s998_s22 }
 0x2dc   : > { %v686_v56 = vstv %s880_s28 }
 0x2dd   : > { %v687_v60 = vsel %vm685_vm0, %v686_v56, 0.0  ;;  %p1005_p11 = por %p1004_p10, %p1003_p9 }
 0x2de   : > { %v703_v32 = vadd.f32 %v687_v60, %v684_v3 }
 0x2df   : > { %p1006_p12 = pnand %p1005_p11, %p1001_p8 }
 0x2e0   : > { %v707_v14 = vadd.f32 %v703_v32, %v702_v4 }
 0x2e2   : > { %v709_v2 = vadd.f32 %v707_v14, %v706_v21 }
 0x305   : > { %v605_v10 = vpop.xlane.xlu1 %604 }
 0x306   : > { %v606_v39 = vrot.slane %v605_v10, 4 }
 0x308   : > { %v607_v19 = vadd.f32 %v606_v39, %v605_v10 }
 0x30a   : > { %v608_v41 = vrot.slane %v607_v19, 2 }
 0x30c   : > { %v609_v8 = vadd.f32 %v608_v41, %v607_v19 }
 0x30d   : > { %v644_v42 = vpop.xlane.xlu1 %643 }
 0x30e   : > { %v645_v20 = vrot.slane %v644_v42, 4  ;;  %v610_v45 = vrot.slane %v609_v8, 1 }
 0x310   : > { %v646_v49 = vadd.f32 %v645_v20, %v644_v42  ;;  %v611_v33 = vadd.f32 %v610_v45, %v609_v8 }
 0x312   : > { %v647_v24 = vrot.slane %v646_v49, 2  ;;  %881 = vpush %v611_v33 }
 0x313   : > { %883 = vpush %v623_v47 }
 0x314   : > { %v648_v51 = vadd.f32 %v647_v24, %v646_v49  ;;  %885 = vpush %v637_v50 }
 0x316   : > { %v649_v52 = vrot.slane %v648_v51, 1 }
 0x318   : > { %v650_v53 = vadd.f32 %v649_v52, %v648_v51 }
 0x31a   : > { %887 = vpush %v650_v53 }
 0x343   : > { %s882_s29 = spop %881 }
 0x344   : > { %s884_s30 = spop %883  ;;  %v689_v17 = vstv %s882_s29 }
 0x345   : > { %s886_s5 = spop %885  ;;  %v692_v7 = vstv %s884_s30  ;;  %v690_v27 = vsel %vm688_vm10, %v689_v17, 0.0 }
 0x346   : > { %v695_v11 = vstv %s886_s5  ;;  %v693_v13 = vsel %vm691_vm11, %v692_v7, 0.0 }
 0x347   : > { %v696_v16 = vsel %vm694_vm12, %v695_v11, 0.0  ;;  %v704_v22 = vadd.f32 %v693_v13, %v690_v27 }
 0x34b   : > { %s888_s6 = spop %887 }
 0x34c   : > { %v698_v6 = vstv %s888_s6 }
 0x34d   : > { %v699_v18 = vsel %vm697_vm14, %v698_v6, 0.0 }
 0x34e   : > { %v705_v55 = vadd.f32 %v699_v18, %v696_v16 }
 0x350   : > { %v708_v54 = vadd.f32 %v705_v55, %v704_v22 }
 0x352   : > { %v710_v25 = vadd.f32 %v709_v2, %v708_v54 }
 0x354   : > { %711 = vst [vmem:[%s221_s10] sm:$0x1] %v710_v25 }
 0x355   : > { %1009 = shalt.err (!%p1006_p12)
}
 0x356   : > { %889 = dma.vmem_to_hbm [thread:$0]  (%p1114_p5), %s728_s11, 16, %s730_s12, %s713_s14  }
 0x357 PF: > { %p900_p13 = scmp.ge.s32.totalorder %s1048_s18, 2  ;;  %s754_s13 = sand.u32 1, %s1036_s15  }
 0x358   : > { %s755_s30 = scalar_lea.sflag [#allocation3], %s754_s13 }
 0x359   : > { %p894_p0 = pnand %p900_p13, %p1118_p6 }
 0x35b   : > { %p895_p1 = pneg %p894_p0 }
 0x35d   : > { %1027 = dma.done.wait (%p895_p1), %s755_s30, 16  }
 0x35e   : > { %1029 = vsyncadd (%p895_p1), %s755_s30, 4294967280  ;;  %s764_s5 = scalar_lea.sflag [#allocation5], %s754_s13 }
 0x35f   : > { %1031 = dma.done.wait (%p895_p1), %s764_s5, 16  }
 0x360   : > { %1033 = vsyncadd (%p895_p1), %s764_s5, 4294967280  ;;  %p18_p5 = scmp.ge.s32.totalorder %s1101_s21, 4   ;;  %s1419_s15 = smov %s1040_s16 }
 0x361   : > { %s1420_s16 = smov %s1044_s17  ;;  %s1421_s17 = smov %s1112_s24 }
 0x362   : > { %s1422_s18 = smov %s1101_s21  ;;  %20 = sbr.rel (!%p18_p5) target bundleno = 5 (0x5), region = 90 }
 0x367   :  { %769 = vsyncpa [#allocation3], 1 }
 0x368   :  { %771 = vsyncpa [#allocation3 + $0x1], 1 }
 0x369   :  { %772 = vsyncpa [#allocation5], 1 }
 0x36a   :  { %774 = vsyncpa [#allocation5 + $0x1], 1 }

</bundles_post_ra>
